<compile_context>
chip_gen: v6e
topology: v6e:2x2x1
jax: 0.10.0
libtpu: 0.0.40
codegen_flags: <defaults>
</compile_context>

<pallas_src>
import functools
import numpy as np

import jax
import jax.numpy as jnp
from jax.experimental import pallas as pl
from jax.experimental.pallas import tpu as pltpu

# ----------------------------------------------------------------------------
# Config (mirrors the `configs` dict handed to TimesBlock.__init__)
# ----------------------------------------------------------------------------
N_ORIGIN_CHANNEL = 4     # C  (self.n_origin_channel)
N_BLOCK_MIDDLE = 8       # hidden channels (self.n_block_middle)
INCEP_N_KERNELS = 2      # self.incep_n_kernels  -> conv kernel sizes 1, 3
TOP_K = 2                # self.k

KMAX = 2 * INCEP_N_KERNELS - 1   # largest inception kernel size (3)
PAD = KMAX // 2                  # 'same' padding of the merged conv (1)

_VMEM_LIMIT = 32 * 1024 * 1024   # explicit scoped-VMEM bound (portable to v7x's 64 MiB)


# ----------------------------------------------------------------------------
# In-kernel math helpers
# ----------------------------------------------------------------------------
def _erf(x):
    # Abramowitz & Stegun 7.1.26 (max abs err ~1.5e-7) — matches torch's exact
    # (erf) GELU to f32 tolerance.  exp() lands on the EUP slot (free); the
    # remaining mul/add/select sit on VALU.
    # TODO(synk): switch to jax.lax.erf if/when its Mosaic lowering is verified.
    a1, a2, a3, a4, a5 = 0.254829592, -0.284496736, 1.421413741, -1.453152027, 1.061405429
    p = 0.3275911
    s = jnp.where(x >= 0.0, 1.0, -1.0)
    ax = jnp.abs(x)
    t = 1.0 / (1.0 + p * ax)
    poly = ((((a5 * t + a4) * t + a3) * t + a2) * t + a1) * t
    return s * (1.0 - poly * jnp.exp(-ax * ax))


def _gelu_exact(x):
    # torch.nn.GELU() default = exact (erf) formulation
    return 0.5 * x * (1.0 + _erf(x * 0.7071067811865476))


# ----------------------------------------------------------------------------
# Pallas kernel 1: Inception -> GELU -> Inception, whole batch per call.
#
# Layout inside the kernel: everything is 2D with (w, c) flattened onto the
# lane axis.  The batch is packed along the row axis with PAD zero separator
# rows between items, so the H-direction 'same' padding and the batch fold
# into the matmul M dimension come for free.
#   xp_ref     : (Hcat, Wp*Cin)          padded input slab (halo zeroed in-kernel)
#   xcat_ref   : (L, KMAX*Wp*Cin)        im2col-along-H patch matrix -> ONE dot
#   midp_ref   : (Hcat, Wp*Cmid)         padded hidden slab
#   midcat_ref : (L, KMAX*Wp*Cmid)       patch matrix for conv2      -> ONE dot
# where Hcat = Bblk*(H+PAD)+PAD and L = Bblk*(H+PAD)-PAD (real rows + junk
# separator rows that are discarded / re-zeroed).
# ----------------------------------------------------------------------------
def _inception_stack_kernel(x_ref, w1_ref, b1_ref, w2_ref, b2_ref, out_ref,
                            xp_ref, xcat_ref, midp_ref, midcat_ref,
                            *, Bblk, H, W, Cin, Cmid):
    Wp = W + 2 * PAD
    stride = H + PAD                      # rows per batch item incl. separator
    Hcat = Bblk * stride + PAD
    L = Bblk * stride - PAD               # rows fed to the matmuls

    # ---- padded input slab: zero ONLY the halo, copy the interior -----------
    zrow_x = jnp.zeros((PAD, Wp * Cin), jnp.float32)
    for b in range(Bblk + 1):             # top pad, inter-batch separators, bottom pad
        xp_ref[b * stride:b * stride + PAD, :] = zrow_x
    zcol_x = jnp.zeros((Hcat, PAD * Cin), jnp.float32)
    xp_ref[:, 0:PAD * Cin] = zcol_x
    xp_ref[:, PAD * Cin + W * Cin:Wp * Cin] = zcol_x
    for b in range(Bblk):                 # lane-dense (H, W*Cin) interior copies
        xp_ref[PAD + b * stride:PAD + b * stride + H,
               PAD * Cin:PAD * Cin + W * Cin] = x_ref[b]

    # ---- conv1: concat the KMAX row-shifted slabs -> single matmul ----------
    for kh in range(KMAX):
        xcat_ref[:, kh * Wp * Cin:(kh + 1) * Wp * Cin] = xp_ref[kh:kh + L, :]
    b1 = b1_ref[...]                                            # (1, W*Cmid), hoisted
    mid = jnp.dot(xcat_ref[...], w1_ref[...],
                  preferred_element_type=jnp.float32) + b1      # (L, W*Cmid)
    mid = _gelu_exact(mid)

    # ---- re-pad the hidden activations (halo only) and repeat for conv2 -----
    zrow_m = jnp.zeros((PAD, Wp * Cmid), jnp.float32)
    zcol_m = jnp.zeros((Hcat, PAD * Cmid), jnp.float32)
    midp_ref[:, 0:PAD * Cmid] = zcol_m
    midp_ref[:, PAD * Cmid + W * Cmid:Wp * Cmid] = zcol_m
    midp_ref[0:PAD, :] = zrow_m
    midp_ref[Hcat - PAD:Hcat, :] = zrow_m
    midp_ref[PAD:PAD + L, PAD * Cmid:PAD * Cmid + W * Cmid] = mid
    for b in range(Bblk - 1):             # re-zero the inter-batch separator rows
        midp_ref[PAD + b * stride + H:PAD + (b + 1) * stride, :] = zrow_m

    for kh in range(KMAX):
        midcat_ref[:, kh * Wp * Cmid:(kh + 1) * Wp * Cmid] = midp_ref[kh:kh + L, :]
    b2 = b2_ref[...]                                            # (1, W*Cin), hoisted
    y = jnp.dot(midcat_ref[...], w2_ref[...],
                preferred_element_type=jnp.float32) + b2        # (L, W*Cin)

    for b in range(Bblk):                 # drop the junk separator rows
        out_ref[b] = y[b * stride:b * stride + H, :].astype(out_ref.dtype)


def inception_stack(xr, w1cat, b1t, w2cat, b2t, *, H, W, Cin, Cmid):
    """xr: (B, H, W*Cin) f32 -> (B, H, W*Cin) f32 (conv1 -> GELU -> conv2)."""
    B = xr.shape[0]
    # Fold the whole batch into the matmul M dimension (one launch).
    # TODO(synk): for large B, shrink Bblk so grid>1 and the 'parallel' axis
    #             shards across v7x's two TensorCores; for B=2 folding wins.
    Bblk = B
    Wp = W + 2 * PAD
    stride = H + PAD
    Hcat = Bblk * stride + PAD
    L = Bblk * stride - PAD

    kernel = functools.partial(_inception_stack_kernel,
                               Bblk=Bblk, H=H, W=W, Cin=Cin, Cmid=Cmid)
    return pl.pallas_call(
        kernel,
        out_shape=jax.ShapeDtypeStruct((B, H, W * Cin), jnp.float32),
        grid=(B // Bblk,),
        in_specs=[
            pl.BlockSpec((Bblk, H, W * Cin), lambda b: (b, 0, 0)),
            pl.BlockSpec(w1cat.shape, lambda b: (0, 0)),
            pl.BlockSpec(b1t.shape, lambda b: (0, 0)),
            pl.BlockSpec(w2cat.shape, lambda b: (0, 0)),
            pl.BlockSpec(b2t.shape, lambda b: (0, 0)),
        ],
        out_specs=pl.BlockSpec((Bblk, H, W * Cin), lambda b: (b, 0, 0)),
        scratch_shapes=[
            pltpu.VMEM((Hcat, Wp * Cin), jnp.float32),
            pltpu.VMEM((L, KMAX * Wp * Cin), jnp.float32),
            pltpu.VMEM((Hcat, Wp * Cmid), jnp.float32),
            pltpu.VMEM((L, KMAX * Wp * Cmid), jnp.float32),
        ],
        compiler_params=pltpu.CompilerParams(
            dimension_semantics=("parallel",),
            vmem_limit_bytes=_VMEM_LIMIT),
    )(xr, w1cat, b1t, w2cat, b2t)


# ----------------------------------------------------------------------------
# Host-side weight lowering: merged inception conv -> banded matmul weights.
# The conv over the (w, c) lane plane becomes  (rows, Wp*Cin) @ (Wp*Cin, W*Cout);
# concatenating the KMAX H-taps along K gives ONE (KMAX*Wp*Cin, W*Cout) matrix.
# TODO(synk): this sizes as O(period^2 * C * Cout); for very large periods
#             switch to a channel-im2col (K = KMAX*KMAX*C) with W tiling.
# ----------------------------------------------------------------------------
def _band_weights(w_eff, bias, W):
    """w_eff: (KMAX, KMAX, Cin, Cout); bias: (Cout,) -> (KMAX*Wp*Cin, W*Cout), (1, W*Cout)."""
    KH, KW, Ci, Co = w_eff.shape
    Wp = W + 2 * PAD
    band = jnp.zeros((KH, Wp * Ci, W * Co), jnp.float32)
    for kw in range(KW):
        blk = w_eff[:, kw, :, :]                       # (KH, Ci, Co)
        for w_out in range(W):
            r0 = (w_out + kw) * Ci
            c0 = w_out * Co
            band = band.at[:, r0:r0 + Ci, c0:c0 + Co].set(blk)
    w_cat = band.reshape(KH * Wp * Ci, W * Co)
    b_t = jnp.tile(jnp.reshape(bias, (1, Co)), (1, W))  # (1, W*Cout)
    return w_cat, b_t


# ----------------------------------------------------------------------------
# Pallas kernel 2: softmax over k period weights, weighted sum, + residual.
# ----------------------------------------------------------------------------
def _combine_kernel(res_ref, pw_ref, x_ref, out_ref, *, k):
    pw = pw_ref[...]                                    # (B, k)
    m = jnp.max(pw, axis=-1, keepdims=True)
    e = jnp.exp(pw - m)
    w = e / jnp.sum(e, axis=-1, keepdims=True)          # softmax over k (tiny)

    acc = x_ref[...].astype(jnp.float32)
    for i in range(k):
        acc = acc + res_ref[i] * w[:, i:i + 1]          # (B, tile) * (B, 1)
    out_ref[...] = acc.astype(out_ref.dtype)


def combine(res_stack, period_weight, x):
    """res_stack: (k, B, T, C); period_weight: (B, k); x: (B, T, C) -> (B, T, C)."""
    k, B, T, C = res_stack.shape
    TC = T * C
    res2d = res_stack.reshape(k, B, TC)
    x2d = x.reshape(B, TC).astype(jnp.float32)

    # Lane-dense tiling of the flattened T*C axis (128-multiples when possible).
    tile = min(TC, 2048) if TC % 128 == 0 else TC
    grid = (pl.cdiv(TC, tile),)

    out = pl.pallas_call(
        functools.partial(_combine_kernel, k=k),
        out_shape=jax.ShapeDtypeStruct((B, TC), jnp.float32),
        grid=grid,
        in_specs=[
            pl.BlockSpec((k, B, tile), lambda t: (0, 0, t)),
            pl.BlockSpec((B, k), lambda t: (0, 0)),
            pl.BlockSpec((B, tile), lambda t: (0, t)),
        ],
        out_specs=pl.BlockSpec((B, tile), lambda t: (0, t)),
        # Residual path aliased onto the output (free HBM when caller donates x).
        input_output_aliases={2: 0},
        compiler_params=pltpu.CompilerParams(
            dimension_semantics=("parallel",),
            vmem_limit_bytes=_VMEM_LIMIT),
    )(res2d, period_weight.astype(jnp.float32), x2d)
    return out.reshape(B, T, C)


# ----------------------------------------------------------------------------
# Glue: FFT_for_Period (data-dependent shapes -> host sync; no Pallas equivalent)
# ----------------------------------------------------------------------------
def fft_for_period(x, k):
    xf = jnp.fft.rfft(x, axis=1)
    amp = jnp.abs(xf)
    freq = amp.mean(axis=0).mean(axis=-1)
    freq = freq.at[0].set(0.0)
    _, top = jax.lax.top_k(freq, k)
    top_np = np.asarray(jax.device_get(top))
    period = x.shape[1] // top_np                       # numpy ints (static shapes)
    period_weight = amp.mean(axis=-1)[:, top_np]        # (B, k)
    return period, period_weight


# ----------------------------------------------------------------------------
# Parameters (deterministic init, mirrors Inception_Block_V1._initialize_weights)
# Exact branch merge: all branches are 'same'-padded and averaged, so the mean
# of zero-padded kernels (and the mean of biases — zero at init) is exact.
# ----------------------------------------------------------------------------
def init_params(key):
    nk = INCEP_N_KERNELS

    def inception_weights(key, cin, cout):
        ws = []
        for i in range(nk):
            ks = 2 * i + 1
            key, sub = jax.random.split(key)
            fan_out = cout * ks * ks
            std = (2.0 / fan_out) ** 0.5                # kaiming_normal, fan_out, relu
            w = jax.random.normal(sub, (cout, cin, ks, ks), jnp.float32) * std
            off = (KMAX - ks) // 2
            wp = jnp.zeros((cout, cin, KMAX, KMAX), jnp.float32)
            wp = wp.at[:, :, off:off + ks, off:off + ks].set(w)
            ws.append(wp)
        w_eff = jnp.mean(jnp.stack(ws, 0), axis=0)      # merged kernel
        w_eff = jnp.transpose(w_eff, (2, 3, 1, 0))      # (KMAX, KMAX, cin, cout)
        b_eff = jnp.zeros((cout,), jnp.float32)         # torch init: bias = 0
        return key, w_eff, b_eff

    key, w1, b1 = inception_weights(key, N_ORIGIN_CHANNEL, N_BLOCK_MIDDLE)
    key, w2, b2 = inception_weights(key, N_BLOCK_MIDDLE, N_ORIGIN_CHANNEL)
    return {"w1": w1, "b1": b1, "w2": w2, "b2": b2}


# ----------------------------------------------------------------------------
# TimesBlock forward
# ----------------------------------------------------------------------------
def _conv_branch(x, period, params):
    B, T, C = x.shape
    if T % period != 0:
        length = (T // period + 1) * period
        xw = jnp.concatenate([x, jnp.zeros((B, length - T, C), x.dtype)], axis=1)
    else:
        length = T
        xw = x
    H, W = length // period, period
    xr = xw.reshape(B, H, W * C)                        # (w, c) flattened -> lane axis

    w1cat, b1t = _band_weights(params["w1"], params["b1"], W)
    w2cat, b2t = _band_weights(params["w2"], params["b2"], W)
    # TODO(synk): at larger channel counts, cast activations/weights to bf16 for
    #             the matmuls on v6e/v7x (keep f32 accumulation).
    out = inception_stack(xr, w1cat, b1t, w2cat, b2t,
                          H=H, W=W, Cin=C, Cmid=N_BLOCK_MIDDLE)
    return out.reshape(B, length, C)[:, :T, :]


def times_block_forward(x, params):
    B, T, C = x.shape
    k = TOP_K
    period_list, period_weight = fft_for_period(x, k)

    cache = {}                                          # duplicate periods computed once
    res = []
    for i in range(k):
        period = int(period_list[i])
        if period not in cache:
            cache[period] = _conv_branch(x, period, params)
        res.append(cache[period])

    res_stack = jnp.stack(res, axis=0)                  # (k, B, T, C)
    return combine(res_stack, period_weight, x)


# ----------------------------------------------------------------------------
# Pure-JAX reference (XLA conv + exact GELU) for a correctness check
# ----------------------------------------------------------------------------
def _reference_forward(x, params):
    B, T, C = x.shape
    period_list, period_weight = fft_for_period(x, TOP_K)

    def conv(img, w_eff, bias):
        out = jax.lax.conv_general_dilated(
            img, w_eff, window_strides=(1, 1), padding="SAME",
            dimension_numbers=("NHWC", "HWIO", "NHWC"),
            precision=jax.lax.Precision.HIGHEST)
        return out + bias.reshape(1, 1, 1, -1)

    res = []
    for i in range(TOP_K):
        p = int(period_list[i])
        length = T if T % p == 0 else (T // p + 1) * p
        xw = x if length == T else jnp.concatenate(
            [x, jnp.zeros((B, length - T, C), x.dtype)], axis=1)
        img = xw.reshape(B, length // p, p, C)
        h = jax.nn.gelu(conv(img, params["w1"], params["b1"]), approximate=False)
        o = conv(h, params["w2"], params["b2"])
        res.append(o.reshape(B, length, C)[:, :T, :])
    res = jnp.stack(res, axis=-1)                       # (B, T, C, k)
    w = jax.nn.softmax(period_weight, axis=1)
    return jnp.sum(res * w[:, None, None, :], axis=-1) + x


# ----------------------------------------------------------------------------
if __name__ == "__main__":
    key = jax.random.PRNGKey(0)
    kx, kp = jax.random.split(key)

    B, T, C = 2, 16, N_ORIGIN_CHANNEL
    x = jax.random.normal(kx, (B, T, C), jnp.float32)
    params = init_params(kp)

    y = times_block_forward(x, params)
    y = jax.block_until_ready(y)

    assert y.shape == (B, T, C), y.shape
    assert bool(jnp.all(jnp.isfinite(y)))

    y_ref = jax.block_until_ready(_reference_forward(x, params))
    assert bool(jnp.allclose(y, y_ref, atol=2e-3, rtol=2e-3)), (
        float(jnp.max(jnp.abs(y - y_ref))))

    print("KERNEL_OK")
</pallas_src>

<mosaic_0001>
module attributes {stable_mosaic.version = 11 : i64} {
  func.func @_inception_stack_kernel(%arg0: i32, %arg1: memref<2x8x8xf32, #tpu.memory_space<vmem>>, %arg2: memref<48x16xf32, #tpu.memory_space<vmem>>, %arg3: memref<1x16xf32, #tpu.memory_space<vmem>>, %arg4: memref<96x8xf32, #tpu.memory_space<vmem>>, %arg5: memref<1x8xf32, #tpu.memory_space<vmem>>, %arg6: memref<2x8x8xf32, #tpu.memory_space<vmem>>, %arg7: memref<19x16xf32, #tpu.memory_space<vmem>>, %arg8: memref<17x48xf32, #tpu.memory_space<vmem>>, %arg9: memref<19x32xf32, #tpu.memory_space<vmem>>, %arg10: memref<17x96xf32, #tpu.memory_space<vmem>>) attributes {dimension_semantics = [#tpu.dimension_semantics<parallel>], iteration_bounds = array<i64: 1>, scalar_prefetch = 0 : i64, scratch_operands = 4 : i64, tpu.core_type = #tpu.core_type<tc>, window_params = [{transform_indices = @transform_0, window_bounds = array<i64: 2, 8, 8>}, {pipeline_mode = #tpu.pipeline_mode<synchronous>, transform_indices = @transform_1, window_bounds = array<i64: 48, 16>}, {pipeline_mode = #tpu.pipeline_mode<synchronous>, transform_indices = @transform_2, window_bounds = array<i64: 1, 16>}, {pipeline_mode = #tpu.pipeline_mode<synchronous>, transform_indices = @transform_3, window_bounds = array<i64: 96, 8>}, {pipeline_mode = #tpu.pipeline_mode<synchronous>, transform_indices = @transform_4, window_bounds = array<i64: 1, 8>}, {transform_indices = @transform_5, window_bounds = array<i64: 2, 8, 8>}]} {
    %cst = arith.constant 0.000000e+00 : f32
    %0 = vector.broadcast %cst : f32 to vector<1x16xf32>
    %c0 = arith.constant 0 : index
    %c0_0 = arith.constant 0 : index
    %1 = vector.load %arg7[%c0, %c0_0] : memref<19x16xf32, #tpu.memory_space<vmem>>, vector<1x16xf32>
    tpu.vector_store %arg7[%c0, %c0_0], %0 {strides = array<i32>} : memref<19x16xf32, #tpu.memory_space<vmem>>, vector<1x16xf32>,
    %c9 = arith.constant 9 : index
    %c0_1 = arith.constant 0 : index
    %2 = vector.load %arg7[%c9, %c0_1] : memref<19x16xf32, #tpu.memory_space<vmem>>, vector<1x16xf32>
    tpu.vector_store %arg7[%c9, %c0_1], %0 {strides = array<i32>} : memref<19x16xf32, #tpu.memory_space<vmem>>, vector<1x16xf32>,
    %c18 = arith.constant 18 : index
    %c0_2 = arith.constant 0 : index
    %3 = vector.load %arg7[%c18, %c0_2] : memref<19x16xf32, #tpu.memory_space<vmem>>, vector<1x16xf32>
    tpu.vector_store %arg7[%c18, %c0_2], %0 {strides = array<i32>} : memref<19x16xf32, #tpu.memory_space<vmem>>, vector<1x16xf32>,
    %cst_3 = arith.constant 0.000000e+00 : f32
    %4 = vector.broadcast %cst_3 : f32 to vector<19x4xf32>
    %c0_4 = arith.constant 0 : index
    %c0_5 = arith.constant 0 : index
    %5 = vector.load %arg7[%c0_4, %c0_5] : memref<19x16xf32, #tpu.memory_space<vmem>>, vector<19x4xf32>
    tpu.vector_store %arg7[%c0_4, %c0_5], %4 {strides = array<i32>} : memref<19x16xf32, #tpu.memory_space<vmem>>, vector<19x4xf32>,
    %c0_6 = arith.constant 0 : index
    %c12 = arith.constant 12 : index
    %6 = vector.load %arg7[%c0_6, %c12] : memref<19x16xf32, #tpu.memory_space<vmem>>, vector<19x4xf32>
    tpu.vector_store %arg7[%c0_6, %c12], %4 {strides = array<i32>} : memref<19x16xf32, #tpu.memory_space<vmem>>, vector<19x4xf32>,
    %c0_7 = arith.constant 0 : index
    %c0_8 = arith.constant 0 : index
    %c0_9 = arith.constant 0 : index
    %7 = vector.load %arg1[%c0_7, %c0_8, %c0_9] : memref<2x8x8xf32, #tpu.memory_space<vmem>>, vector<1x8x8xf32>
    %8 = vector.shape_cast %7 : vector<1x8x8xf32> to vector<8x8xf32>
    %c1 = arith.constant 1 : index
    %c4 = arith.constant 4 : index
    %9 = vector.load %arg7[%c1, %c4] : memref<19x16xf32, #tpu.memory_space<vmem>>, vector<8x8xf32>
    tpu.vector_store %arg7[%c1, %c4], %8 {strides = array<i32>} : memref<19x16xf32, #tpu.memory_space<vmem>>, vector<8x8xf32>,
    %c1_10 = arith.constant 1 : index
    %c0_11 = arith.constant 0 : index
    %c0_12 = arith.constant 0 : index
    %10 = vector.load %arg1[%c1_10, %c0_11, %c0_12] : memref<2x8x8xf32, #tpu.memory_space<vmem>>, vector<1x8x8xf32>
    %11 = vector.shape_cast %10 : vector<1x8x8xf32> to vector<8x8xf32>
    %c10 = arith.constant 10 : index
    %c4_13 = arith.constant 4 : index
    %12 = vector.load %arg7[%c10, %c4_13] : memref<19x16xf32, #tpu.memory_space<vmem>>, vector<8x8xf32>
    tpu.vector_store %arg7[%c10, %c4_13], %11 {strides = array<i32>} : memref<19x16xf32, #tpu.memory_space<vmem>>, vector<8x8xf32>,
    %c0_14 = arith.constant 0 : index
    %c0_15 = arith.constant 0 : index
    %13 = vector.load %arg7[%c0_14, %c0_15] : memref<19x16xf32, #tpu.memory_space<vmem>>, vector<17x16xf32>
    %c0_16 = arith.constant 0 : index
    %c0_17 = arith.constant 0 : index
    %14 = vector.load %arg8[%c0_16, %c0_17] : memref<17x48xf32, #tpu.memory_space<vmem>>, vector<17x16xf32>
    tpu.vector_store %arg8[%c0_16, %c0_17], %13 {strides = array<i32>} : memref<17x48xf32, #tpu.memory_space<vmem>>, vector<17x16xf32>,
    %c1_18 = arith.constant 1 : index
    %c0_19 = arith.constant 0 : index
    %15 = vector.load %arg7[%c1_18, %c0_19] : memref<19x16xf32, #tpu.memory_space<vmem>>, vector<17x16xf32>
    %c0_20 = arith.constant 0 : index
    %c16 = arith.constant 16 : index
    %16 = vector.load %arg8[%c0_20, %c16] : memref<17x48xf32, #tpu.memory_space<vmem>>, vector<17x16xf32>
    tpu.vector_store %arg8[%c0_20, %c16], %15 {strides = array<i32>} : memref<17x48xf32, #tpu.memory_space<vmem>>, vector<17x16xf32>,
    %c2 = arith.constant 2 : index
    %c0_21 = arith.constant 0 : index
    %17 = vector.load %arg7[%c2, %c0_21] : memref<19x16xf32, #tpu.memory_space<vmem>>, vector<17x16xf32>
    %c0_22 = arith.constant 0 : index
    %c32 = arith.constant 32 : index
    %18 = vector.load %arg8[%c0_22, %c32] : memref<17x48xf32, #tpu.memory_space<vmem>>, vector<17x16xf32>
    tpu.vector_store %arg8[%c0_22, %c32], %17 {strides = array<i32>} : memref<17x48xf32, #tpu.memory_space<vmem>>, vector<17x16xf32>,
    %c0_23 = arith.constant 0 : index
    %c0_24 = arith.constant 0 : index
    %19 = vector.load %arg3[%c0_23, %c0_24] : memref<1x16xf32, #tpu.memory_space<vmem>>, vector<1x16xf32>
    %c0_25 = arith.constant 0 : index
    %c0_26 = arith.constant 0 : index
    %20 = vector.load %arg8[%c0_25, %c0_26] : memref<17x48xf32, #tpu.memory_space<vmem>>, vector<17x48xf32>
    %c0_27 = arith.constant 0 : index
    %c0_28 = arith.constant 0 : index
    %21 = vector.load %arg2[%c0_27, %c0_28] : memref<48x16xf32, #tpu.memory_space<vmem>>, vector<48x16xf32>
    %cst_29 = arith.constant dense<0.000000e+00> : vector<17x16xf32>
    %22 = tpu.matmul %20, %21, %cst_29 {dimension_numbers = #tpu.dot_dimension_numbers<[1], [0], [0], [1], [0, 0, 1, 1], [], []>} : vector<17x48xf32>, vector<48x16xf32>, vector<17x16xf32> -> vector<17x16xf32>
    %23 = vector.broadcast %19 : vector<1x16xf32> to vector<17x16xf32>
    %24 = arith.addf %22, %23 : vector<17x16xf32>
    %cst_30 = arith.constant 5.000000e-01 : f32
    %25 = vector.broadcast %cst_30 : f32 to vector<17x16xf32>
    %26 = arith.mulf %25, %24 : vector<17x16xf32>
    %cst_31 = arith.constant 0.707106769 : f32
    %27 = vector.broadcast %cst_31 : f32 to vector<17x16xf32>
    %28 = arith.mulf %24, %27 : vector<17x16xf32>
    %cst_32 = arith.constant 0.000000e+00 : f32
    %29 = vector.broadcast %cst_32 : f32 to vector<17x16xf32>
    %30 = arith.cmpf oge, %28, %29 : vector<17x16xf32>
    %cst_33 = arith.constant 1.000000e+00 : f32
    %cst_34 = arith.constant -1.000000e+00 : f32
    %31 = vector.broadcast %cst_33 : f32 to vector<17x16xf32>
    %32 = vector.broadcast %cst_34 : f32 to vector<17x16xf32>
    %33 = arith.select %30, %31, %32 : vector<17x16xi1>, vector<17x16xf32>
    %34 = math.absf %28 : vector<17x16xf32>
    %cst_35 = arith.constant 0.327591091 : f32
    %35 = vector.broadcast %cst_35 : f32 to vector<17x16xf32>
    %36 = arith.mulf %35, %34 : vector<17x16xf32>
    %cst_36 = arith.constant 1.000000e+00 : f32
    %37 = vector.broadcast %cst_36 : f32 to vector<17x16xf32>
    %38 = arith.addf %37, %36 : vector<17x16xf32>
    %cst_37 = arith.constant 1.000000e+00 : f32
    %39 = vector.broadcast %cst_37 : f32 to vector<17x16xf32>
    %40 = arith.divf %39, %38 : vector<17x16xf32>
    %cst_38 = arith.constant 1.06140542 : f32
    %41 = vector.broadcast %cst_38 : f32 to vector<17x16xf32>
    %42 = arith.mulf %41, %40 : vector<17x16xf32>
    %cst_39 = arith.constant -1.45315206 : f32
    %43 = vector.broadcast %cst_39 : f32 to vector<17x16xf32>
    %44 = arith.addf %42, %43 : vector<17x16xf32>
    %45 = arith.mulf %44, %40 : vector<17x16xf32>
    %cst_40 = arith.constant 1.42141378 : f32
    %46 = vector.broadcast %cst_40 : f32 to vector<17x16xf32>
    %47 = arith.addf %45, %46 : vector<17x16xf32>
    %48 = arith.mulf %47, %40 : vector<17x16xf32>
    %cst_41 = arith.constant -0.284496725 : f32
    %49 = vector.broadcast %cst_41 : f32 to vector<17x16xf32>
    %50 = arith.addf %48, %49 : vector<17x16xf32>
    %51 = arith.mulf %50, %40 : vector<17x16xf32>
    %cst_42 = arith.constant 0.254829586 : f32
    %52 = vector.broadcast %cst_42 : f32 to vector<17x16xf32>
    %53 = arith.addf %51, %52 : vector<17x16xf32>
    %54 = arith.mulf %53, %40 : vector<17x16xf32>
    %cst_43 = arith.constant 0.000000e+00 : f32
    %55 = vector.broadcast %cst_43 : f32 to vector<17x16xf32>
    %56 = arith.subf %55, %34 : vector<17x16xf32>
    %57 = arith.mulf %56, %34 : vector<17x16xf32>
    %58 = math.exp %57 : vector<17x16xf32>
    %59 = arith.mulf %54, %58 : vector<17x16xf32>
    %cst_44 = arith.constant 1.000000e+00 : f32
    %60 = vector.broadcast %cst_44 : f32 to vector<17x16xf32>
    %61 = arith.subf %60, %59 : vector<17x16xf32>
    %62 = arith.mulf %33, %61 : vector<17x16xf32>
    %cst_45 = arith.constant 1.000000e+00 : f32
    %63 = vector.broadcast %cst_45 : f32 to vector<17x16xf32>
    %64 = arith.addf %63, %62 : vector<17x16xf32>
    %65 = arith.mulf %26, %64 : vector<17x16xf32>
    %cst_46 = arith.constant 0.000000e+00 : f32
    %66 = vector.broadcast %cst_46 : f32 to vector<1x32xf32>
    %cst_47 = arith.constant 0.000000e+00 : f32
    %67 = vector.broadcast %cst_47 : f32 to vector<19x8xf32>
    %c0_48 = arith.constant 0 : index
    %c0_49 = arith.constant 0 : index
    %68 = vector.load %arg9[%c0_48, %c0_49] : memref<19x32xf32, #tpu.memory_space<vmem>>, vector<19x8xf32>
    tpu.vector_store %arg9[%c0_48, %c0_49], %67 {strides = array<i32>} : memref<19x32xf32, #tpu.memory_space<vmem>>, vector<19x8xf32>,
    %c0_50 = arith.constant 0 : index
    %c24 = arith.constant 24 : index
    %69 = vector.load %arg9[%c0_50, %c24] : memref<19x32xf32, #tpu.memory_space<vmem>>, vector<19x8xf32>
    tpu.vector_store %arg9[%c0_50, %c24], %67 {strides = array<i32>} : memref<19x32xf32, #tpu.memory_space<vmem>>, vector<19x8xf32>,
    %c0_51 = arith.constant 0 : index
    %c0_52 = arith.constant 0 : index
    %70 = vector.load %arg9[%c0_51, %c0_52] : memref<19x32xf32, #tpu.memory_space<vmem>>, vector<1x32xf32>
    tpu.vector_store %arg9[%c0_51, %c0_52], %66 {strides = array<i32>} : memref<19x32xf32, #tpu.memory_space<vmem>>, vector<1x32xf32>,
    %c18_53 = arith.constant 18 : index
    %c0_54 = arith.constant 0 : index
    %71 = vector.load %arg9[%c18_53, %c0_54] : memref<19x32xf32, #tpu.memory_space<vmem>>, vector<1x32xf32>
    tpu.vector_store %arg9[%c18_53, %c0_54], %66 {strides = array<i32>} : memref<19x32xf32, #tpu.memory_space<vmem>>, vector<1x32xf32>,
    %c1_55 = arith.constant 1 : index
    %c8 = arith.constant 8 : index
    %72 = vector.load %arg9[%c1_55, %c8] : memref<19x32xf32, #tpu.memory_space<vmem>>, vector<17x16xf32>
    tpu.vector_store %arg9[%c1_55, %c8], %65 {strides = array<i32>} : memref<19x32xf32, #tpu.memory_space<vmem>>, vector<17x16xf32>,
    %c9_56 = arith.constant 9 : index
    %c0_57 = arith.constant 0 : index
    %73 = vector.load %arg9[%c9_56, %c0_57] : memref<19x32xf32, #tpu.memory_space<vmem>>, vector<1x32xf32>
    tpu.vector_store %arg9[%c9_56, %c0_57], %66 {strides = array<i32>} : memref<19x32xf32, #tpu.memory_space<vmem>>, vector<1x32xf32>,
    %c0_58 = arith.constant 0 : index
    %c0_59 = arith.constant 0 : index
    %74 = vector.load %arg9[%c0_58, %c0_59] : memref<19x32xf32, #tpu.memory_space<vmem>>, vector<17x32xf32>
    %c0_60 = arith.constant 0 : index
    %c0_61 = arith.constant 0 : index
    %75 = vector.load %arg10[%c0_60, %c0_61] : memref<17x96xf32, #tpu.memory_space<vmem>>, vector<17x32xf32>
    tpu.vector_store %arg10[%c0_60, %c0_61], %74 {strides = array<i32>} : memref<17x96xf32, #tpu.memory_space<vmem>>, vector<17x32xf32>,
    %c1_62 = arith.constant 1 : index
    %c0_63 = arith.constant 0 : index
    %76 = vector.load %arg9[%c1_62, %c0_63] : memref<19x32xf32, #tpu.memory_space<vmem>>, vector<17x32xf32>
    %c0_64 = arith.constant 0 : index
    %c32_65 = arith.constant 32 : index
    %77 = vector.load %arg10[%c0_64, %c32_65] : memref<17x96xf32, #tpu.memory_space<vmem>>, vector<17x32xf32>
    tpu.vector_store %arg10[%c0_64, %c32_65], %76 {strides = array<i32>} : memref<17x96xf32, #tpu.memory_space<vmem>>, vector<17x32xf32>,
    %c2_66 = arith.constant 2 : index
    %c0_67 = arith.constant 0 : index
    %78 = vector.load %arg9[%c2_66, %c0_67] : memref<19x32xf32, #tpu.memory_space<vmem>>, vector<17x32xf32>
    %c0_68 = arith.constant 0 : index
    %c64 = arith.constant 64 : index
    %79 = vector.load %arg10[%c0_68, %c64] : memref<17x96xf32, #tpu.memory_space<vmem>>, vector<17x32xf32>
    tpu.vector_store %arg10[%c0_68, %c64], %78 {strides = array<i32>} : memref<17x96xf32, #tpu.memory_space<vmem>>, vector<17x32xf32>,
    %c0_69 = arith.constant 0 : index
    %c0_70 = arith.constant 0 : index
    %80 = vector.load %arg5[%c0_69, %c0_70] : memref<1x8xf32, #tpu.memory_space<vmem>>, vector<1x8xf32>
    %c0_71 = arith.constant 0 : index
    %c0_72 = arith.constant 0 : index
    %81 = vector.load %arg10[%c0_71, %c0_72] : memref<17x96xf32, #tpu.memory_space<vmem>>, vector<17x96xf32>
    %c0_73 = arith.constant 0 : index
    %c0_74 = arith.constant 0 : index
    %82 = vector.load %arg4[%c0_73, %c0_74] : memref<96x8xf32, #tpu.memory_space<vmem>>, vector<96x8xf32>
    %cst_75 = arith.constant dense<0.000000e+00> : vector<17x8xf32>
    %83 = tpu.matmul %81, %82, %cst_75 {dimension_numbers = #tpu.dot_dimension_numbers<[1], [0], [0], [1], [0, 0, 1, 1], [], []>} : vector<17x96xf32>, vector<96x8xf32>, vector<17x8xf32> -> vector<17x8xf32>
    %84 = vector.broadcast %80 : vector<1x8xf32> to vector<17x8xf32>
    %85 = arith.addf %83, %84 : vector<17x8xf32>
    %86 = vector.extract_strided_slice %85 {offsets = [0, 0], sizes = [8, 8], strides = [1, 1]} : vector<17x8xf32> to vector<8x8xf32>
    %c0_76 = arith.constant 0 : index
    %c0_77 = arith.constant 0 : index
    %c0_78 = arith.constant 0 : index
    %87 = vector.load %arg6[%c0_76, %c0_77, %c0_78] : memref<2x8x8xf32, #tpu.memory_space<vmem>>, vector<1x8x8xf32>
    %88 = vector.shape_cast %87 : vector<1x8x8xf32> to vector<8x8xf32>
    %89 = vector.shape_cast %86 : vector<8x8xf32> to vector<1x8x8xf32>
    tpu.vector_store %arg6[%c0_76, %c0_77, %c0_78], %89 {strides = array<i32>} : memref<2x8x8xf32, #tpu.memory_space<vmem>>, vector<1x8x8xf32>,
    %90 = vector.extract_strided_slice %85 {offsets = [9, 0], sizes = [8, 8], strides = [1, 1]} : vector<17x8xf32> to vector<8x8xf32>
    %c1_79 = arith.constant 1 : index
    %c0_80 = arith.constant 0 : index
    %c0_81 = arith.constant 0 : index
    %91 = vector.load %arg6[%c1_79, %c0_80, %c0_81] : memref<2x8x8xf32, #tpu.memory_space<vmem>>, vector<1x8x8xf32>
    %92 = vector.shape_cast %91 : vector<1x8x8xf32> to vector<8x8xf32>
    %93 = vector.shape_cast %90 : vector<8x8xf32> to vector<1x8x8xf32>
    tpu.vector_store %arg6[%c1_79, %c0_80, %c0_81], %93 {strides = array<i32>} : memref<2x8x8xf32, #tpu.memory_space<vmem>>, vector<1x8x8xf32>,
    return
  }
  func.func @transform_0(%arg0: i32) -> (i32, i32, i32) {
    %c0_i32 = arith.constant 0 : i32
    %c0_i32_0 = arith.constant 0 : i32
    %c0_i32_1 = arith.constant 0 : i32
    return %arg0, %c0_i32, %c0_i32_0 : i32, i32, i32
  }
  func.func @transform_1(%arg0: i32) -> (i32, i32) {
    %c0_i32 = arith.constant 0 : i32
    %c0_i32_0 = arith.constant 0 : i32
    %c0_i32_1 = arith.constant 0 : i32
    return %c0_i32, %c0_i32_0 : i32, i32
  }
  func.func @transform_2(%arg0: i32) -> (i32, i32) {
    %c0_i32 = arith.constant 0 : i32
    %c0_i32_0 = arith.constant 0 : i32
    %c0_i32_1 = arith.constant 0 : i32
    return %c0_i32, %c0_i32_0 : i32, i32
  }
  func.func @transform_3(%arg0: i32) -> (i32, i32) {
    %c0_i32 = arith.constant 0 : i32
    %c0_i32_0 = arith.constant 0 : i32
    %c0_i32_1 = arith.constant 0 : i32
    return %c0_i32, %c0_i32_0 : i32, i32
  }
  func.func @transform_4(%arg0: i32) -> (i32, i32) {
    %c0_i32 = arith.constant 0 : i32
    %c0_i32_0 = arith.constant 0 : i32
    %c0_i32_1 = arith.constant 0 : i32
    return %c0_i32, %c0_i32_0 : i32, i32
  }
  func.func @transform_5(%arg0: i32) -> (i32, i32, i32) {
    %c0_i32 = arith.constant 0 : i32
    %c0_i32_0 = arith.constant 0 : i32
    %c0_i32_1 = arith.constant 0 : i32
    return %arg0, %c0_i32, %c0_i32_0 : i32, i32, i32
  }
}

</mosaic_0001>

<bundles_post_ra>
// kernel: tpu_custom_call.1
= control target key start
LH: loop header
LB: loop body
LE: loop exit
PB: predicated region body
PF: predicated region fallthrough
CT: control target
= control target key end

     0   :  { %vm21_vm0 = vcmask 122880   ;;  %s626_s20 = smov 4   ;;  %v627_v1 = vmov 0.0   ;;  %vm25_vm1 = vcmask 31744   ;;  %vm30_vm2 = vcmask 130144   ;;  %s832_s0 = inlined_call_operand.vmem [shape: f32[2,8,8], index: 0, kind: input, shape index: {}]   ;;  %s833_s1 = inlined_call_operand.vmem [shape: f32[48,16], index: 1, kind: input, shape index: {}]   ;;  %s834_s2 = inlined_call_operand.vmem [shape: f32[1,16], index: 2, kind: input, shape index: {}]   ;;  %s835_s3 = inlined_call_operand.vmem [shape: f32[96,8], index: 3, kind: input, shape index: {}]   ;;  %s836_s4 = inlined_call_operand.vmem [shape: f32[1,8], index: 4, kind: input, shape index: {}]   ;;  %s837_s5 = inlined_call_operand.hbm [shape: f32[2,8,8], index: 5, kind: output, shape index: {}]  }
   0x1   :  { %v35_v0 = vld [vmem:[%s832_s0] sm:$0xff]  ;;  %22 = vst.msk [vmem:[#allocation2] sm:$0x1] %vm21_vm0, %v627_v1  ;;  %23 = vst.msk [vmem:[#allocation2 + $0x9] sm:$0x1] %vm21_vm0, %v627_v1  ;;  %vm28_vm3 = vcmask 26624   ;;  %528 = vmatprep.subr.mxu0 %v627_v1  ;;  %549 = vmatprep.subr.mxu1 %v627_v1 }
   0x2   :  { %37 = vrot.lane.b32.xlu0 %v35_v0, %s626_s20  ;;  %24 = vst.msk [vmem:[#allocation2 + $0x12] sm:$0x1] %vm21_vm0, %v627_v1  ;;  %vm33_vm4 = vcmask 125024   ;;  %v495_v2 = vld [vmem:[%s832_s0 + $0x8] sm:$0xff] }
   0x3   :  { %26 = vst.msk [vmem:[#allocation2] sm:$0xff] %vm25_vm1, %v627_v1  ;;  %27 = vst.msk [vmem:[#allocation2 + $0x8] sm:$0xff] %vm25_vm1, %v627_v1 }
   0x4   :  { %29 = vst.msk [vmem:[#allocation2 + $0x10] sm:$0x7] %vm28_vm3, %v627_v1 }
   0x5   :  { %10 = vsyncpa [#allocation7], 0  ;;  %31 = vst.msk [vmem:[#allocation2] sm:$0xff] %vm30_vm2, %v627_v1  ;;  %v105_v3 = vld [vmem:[%s833_s1 + $0x28] sm:$0xff]  ;;  %v104_v4 = vld [vmem:[%s833_s1 + $0x20] sm:$0xff]  ;;  %vm40_vm5 = vcmask 97312  }
   0x6   :  { %32 = vst.msk [vmem:[#allocation2 + $0x8] sm:$0xff] %vm30_vm2, %v627_v1  ;;  %45 = vrot.lane.b32.xlu0 %v495_v2, %s626_s20  ;;  %529 = vmatpush3.msra.mxu0 %v105_v3  ;;  %v103_v6 = vld [vmem:[%s833_s1 + $0x18] sm:$0xff]  ;;  %v102_v7 = vld [vmem:[%s833_s1 + $0x10] sm:$0xff]  ;;  %v101_v9 = vld [vmem:[%s833_s1 + $0x8] sm:$0xff]  ;;  %vm628_vm6 = vmmov 0   ;;  %vm52_vm7 = vcmask 130048  }
   0x7   :  { %34 = vst.msk [vmem:[#allocation2 + $0x10] sm:$0x7] %vm33_vm4, %v627_v1  ;;  %530 = vmatprep.subr.mxu0 %v627_v1  ;;  %v100_v10 = vld [vmem:[%s833_s1] sm:$0xff]  ;;  %540 = vmatprep.mubr.msk.f32.mxu0 %vm628_vm6, %v627_v1  ;;  %s629_s9 = smov 16   ;;  %s630_s1 = smov 32   ;;  %vm71_vm8 = vcmask 261248  }
   0x8   :  { %531 = vmatpush3.msra.mxu0 %v104_v4  ;;  %573 = vmatprep.mubr.msk.f32.mxu1 %vm628_vm6, %v627_v1  ;;  %vm91_vm9 = vcmask 392448   ;;  %vm74_vm10 = vcmask 254080   ;;  %vm94_vm11 = vcmask 385280   ;;  %vm112_vm12 = vcmask 392192   ;;  %v496_v29 = vld [vmem:[%s834_s2] ss:$0 sm:$0xff] }
   0x9   :  { %532 = vmatprep.subr.mxu0 %v627_v1  ;;  %vm283_vm13 = vcmask 64512   ;;  %vm288_vm14 = vcmask 261312   ;;  %vm293_vm15 = vcmask 253952   ;;  %vm291_vm1 = vcmask 256192   ;;  %s632_s2 = smov 8   ;;  %s634_s11 = smov [#allocation6]  }
   0xa   :  { %533 = vmatpush3.msra.mxu0 %v103_v6  ;;  %284 = vst.msk [vmem:[#allocation4] sm:$0xff] %vm283_vm13, %v627_v1  ;;  %285 = vst.msk [vmem:[#allocation4 + $0x8] sm:$0xff] %vm283_vm13, %v627_v1  ;;  %s484_s12 = sshll.u32 %s634_s11, 4  ;;  %s485_s12 = int_to_ptr.vmem [resolvable:$true] %s484_s12 }
   0xb   :  { %534 = vmatprep.subr.mxu0 %v627_v1  ;;  %289 = vst.msk [vmem:[#allocation4] sm:$0xff] %vm288_vm14, %v627_v1  ;;  %290 = vst.msk [vmem:[#allocation4 + $0x8] sm:$0xff] %vm288_vm14, %v627_v1  ;;  %vm383_vm14 = vcmask 785408   ;;  %s604_s13 = scalar_lea.vmem %s485_s12, 256  ;;  %p609_p1 = scmp.lt.s32.totalorder %s485_s12, %s485_s12 }
   0xc   :  { %535 = vmatpush3.msra.mxu0 %v102_v7  ;;  %294 = vst.msk [vmem:[#allocation4] sm:$0x1] %vm293_vm15, %v627_v1  ;;  %p605_p0 = scmp.ne.s32.totalorder %s485_s12, %s604_s13  ;;  %p610_p2 = scmp.lt.s32.totalorder %s604_s13, %s604_s13 }
   0xd   :  { %536 = vmatprep.subr.mxu0 %v627_v1 }
   0xe   :  { %537 = vmatpush3.msra.mxu0 %v101_v9  ;;  %v78_v19 = vld [vmem:[#allocation2 + $0x12] sm:$0x1]  ;;  %p611_p3 = por %p610_p2, %p609_p1 }
   0xf   :  { %538 = vmatprep.subr.mxu0 %v627_v1 }
  0x10   :  { %539 = vmatpush3.msra.mxu0 %v100_v10  ;;  %p612_p4 = pnand %p611_p3, %p605_p0 }
  0x74   :  { %v38_v5 = vpop.permute.xlu0 %37 }
  0x75   :  { %41 = vst.msk [vmem:[#allocation2 + $0x1] sm:$0xff] %vm40_vm5, %v38_v5 }
  0x78   :  { %v46_v8 = vpop.permute.xlu0 %45 }
  0x79   :  { %48 = vst.msk [vmem:[#allocation2 + $0xa] sm:$0xff] %vm40_vm5, %v46_v8  ;;  %vm308_vm5 = vcmask 195648  }
  0x7c   :  { %v56_v11 = vld [vmem:[#allocation2 + $0x1] sm:$0xff] }
  0x7d   :  { %v49_v12 = vld [vmem:[#allocation2] sm:$0xff]  ;;  %62 = vrot.lane.b32.xlu1 %v56_v11, %s629_s9 }
  0x7e   :  { %53 = vst.msk [vmem:[#allocation3] sm:$0xff] %vm52_vm7, %v49_v12  ;;  %v76_v14 = vld [vmem:[#allocation2 + $0x2] sm:$0xff] }
  0x80   :  { %v57_v13 = vld [vmem:[#allocation2 + $0x9] sm:$0xff]  ;;  %v58_v17 = vld [vmem:[#allocation2 + $0x11] sm:$0x1] }
  0x81   :  { %64 = vrot.lane.b32.xlu0 %v57_v13, %s629_s9  ;;  %82 = vrot.lane.b32.xlu1 %v76_v14, %s630_s1  ;;  %v50_v15 = vld [vmem:[#allocation2 + $0x8] sm:$0xff]  ;;  %v51_v16 = vld [vmem:[#allocation2 + $0x10] sm:$0x1] }
  0x82   :  { %v77_v18 = vld [vmem:[#allocation2 + $0xa] sm:$0xff]  ;;  %54 = vst.msk [vmem:[#allocation3 + $0x8] sm:$0xff] %vm52_vm7, %v50_v15  ;;  %vm317_vm7 = vcmask 261120  }
  0x83   :  { %55 = vst.msk [vmem:[#allocation3 + $0x10] sm:$0x1] %vm21_vm0, %v51_v16  ;;  %vm286_vm0 = vcmask 59392  }
  0x84   :  { %287 = vst.msk [vmem:[#allocation4 + $0x10] sm:$0x7] %vm286_vm0, %v627_v1 }
  0x85   :  { %66 = vrot.lane.b32.xlu0 %v58_v17, %s629_s9  ;;  %84 = vrot.lane.b32.xlu1 %v77_v18, %s630_s1  ;;  %292 = vst.msk [vmem:[#allocation4 + $0x10] sm:$0x7] %vm291_vm1, %v627_v1 }
  0x86   :  { %295 = vst.msk [vmem:[#allocation4 + $0x12] sm:$0x1] %vm293_vm15, %v627_v1 }
  0x89   :  { %86 = vrot.lane.b32.xlu1 %v78_v19, %s630_s1 }
  0xef   :  { %v63_v20 = vpop.permute.xlu1 %62 }
  0xf0   :  { %72 = vst.msk [vmem:[#allocation3] sm:$0xff] %vm71_vm8, %v63_v20 }
  0xf3   :  { %v65_v21 = vpop.permute.xlu0 %64  ;;  %v83_v22 = vpop.permute.xlu1 %82 }
  0xf4   :  { %73 = vst.msk [vmem:[#allocation3 + $0x8] sm:$0xff] %vm71_vm8, %v65_v21  ;;  %vm311_vm8 = vcmask 188480  }
  0xf5   :  { %92 = vst.msk [vmem:[#allocation3] sm:$0xff] %vm91_vm9, %v83_v22 }
  0xf7   :  { %v67_v23 = vpop.permute.xlu0 %66  ;;  %v85_v24 = vpop.permute.xlu1 %84 }
  0xf8   :  { %75 = vst.msk [vmem:[#allocation3 + $0x10] sm:$0x1] %vm74_vm10, %v67_v23  ;;  %vm356_vm10 = vcmask 785920  }
  0xf9   :  { %93 = vst.msk [vmem:[#allocation3 + $0x8] sm:$0xff] %vm91_vm9, %v85_v24  ;;  %vm336_vm9 = vcmask 523520  }
  0xfb   :  { %v87_v25 = vpop.permute.xlu1 %86 }
  0xfc   :  { %v97_v26 = vld [vmem:[#allocation3] sm:$0xff]  ;;  %95 = vst.msk [vmem:[#allocation3 + $0x10] sm:$0x1] %vm94_vm11, %v87_v25  ;;  %vm339_vm11 = vcmask 516352  }
  0xfd   :  { %541 = vmatmul.mubr.msk.f32.vlgmr.msra.gmra.mxu0 %vm112_vm12, %v97_v26 }
  0xfe   :  { %543 = vmatprep.mubr.msk.f32.mxu0 %vm628_vm6, %v627_v1 }
 0x100   :  { %v98_v27 = vld [vmem:[#allocation3 + $0x8] sm:$0xff] }
 0x101   :  { %544 = vmatmul.mubr.msk.f32.gmra.mxu0 %vm112_vm12, %v98_v27 }
 0x102   :  { %546 = vmatprep.mubr.msk.f32.mxu0 %vm628_vm6, %v627_v1 }
 0x103   :  { %v99_v28 = vld [vmem:[#allocation3 + $0x10] sm:$0x1] }
 0x105   :  { %547 = vmatmul.mubr.msk.f32.gmra.mxu0 %vm112_vm12, %v99_v28  ;;  %v631_v28 = vmov -1.0   ;;  %vm359_vm12 = vcmask 778752  }
 0x1bd   :  { %v188_v30 = vpop.f32.mrf.mxu0 }
 0x1be   :  { %v734_v31 = vadd.f32 %v496_v29, %v188_v30 }
 0x1bf   :  { %v542_v32 = vpop.f32.mrf.mxu0 }
 0x1c0   :  { %v737_v33 = vmul.f32 0.70710677, %v734_v31 }
 0x1c1   :  { %v193_v34 = vpop.f32.mrf.mxu0 }
 0x1c2   :  { %v214_v35 = vand.u32 2147483647, %v737_v33  ;;  %v740_v36 = vadd.f32 %v496_v29, %v193_v34  ;;  %vm208_vm2 = vcmp.ge.f32.partialorder %v737_v33, 0.0 }
 0x1c3   :  { %v545_v37 = vpop.f32.mrf.mxu0 }
 0x1c4   :  { %v217_v38 = vmul.f32 0.3275911, %v214_v35  ;;  %v743_v39 = vmul.f32 0.70710677, %v740_v36  ;;  %v256_v50 = vsub.f32 0.0, %v214_v35  ;;  %v202_v37 = vmul.f32 0.5, %v734_v31 }
 0x1c5   :  { %v198_v40 = vpop.f32.mrf.mxu0 }
 0x1c6   :  { %v220_v41 = vadd.f32 1.0, %v217_v38  ;;  %v215_v42 = vand.u32 2147483647, %v743_v39  ;;  %v746_v43 = vadd.f32 %v496_v29, %v198_v40  ;;  %v259_v52 = vmul.f32 %v256_v50, %v214_v35 }
 0x1c7   :  { %v548_v44 = vpop.f32.mrf.mxu0  ;;  %v211_v29 = vsel %vm208_vm2, 1.0, %v631_v28  ;;  %vm209_vm3 = vcmp.ge.f32.partialorder %v743_v39, 0.0 }
 0x1c8   :  { %592 = vrcp.f32 %v220_v41  ;;  %v218_v45 = vmul.f32 0.3275911, %v215_v42  ;;  %v749_v46 = vmul.f32 0.70710677, %v746_v43  ;;  %v257_v53 = vsub.f32 0.0, %v215_v42 }
 0x1c9   :  { %v262_v55 = vmul.f32 1.442695, %v259_v52  ;;  %v212_v40 = vsel %vm209_vm3, 1.0, %v631_v28  ;;  %v204_v52 = vmul.f32 0.5, %v746_v43  ;;  %v373_v43 = vld [vmem:[%s835_s3 + $0x40] sm:$0xff] }
 0x1ca   :  { %v221_v47 = vadd.f32 1.0, %v218_v45  ;;  %v216_v48 = vand.u32 2147483647, %v749_v46  ;;  %v260_v56 = vmul.f32 %v257_v53, %v215_v42  ;;  %vm210_vm4 = vcmp.ge.f32.partialorder %v749_v46, 0.0  ;;  %v376_v46 = vld [vmem:[%s835_s3 + $0x58] sm:$0xff] }
 0x1cb   :  { %v213_v50 = vsel %vm210_vm4, 1.0, %v631_v28  ;;  %550 = vmatpush3.msra.mxu1 %v376_v46 }
 0x1cc   :  { %594 = vrcp.f32 %v221_v47  ;;  %v219_v49 = vmul.f32 0.3275911, %v216_v48  ;;  %v258_v58 = vsub.f32 0.0, %v216_v48  ;;  %v264_v61 = vmul.f32 1.442695, %v260_v56  ;;  %551 = vmatprep.subr.mxu1 %v627_v1  ;;  %v372_v56 = vld [vmem:[%s835_s3 + $0x38] sm:$0xff] }
 0x1ce   :  { %v222_v51 = vadd.f32 1.0, %v219_v49  ;;  %v261_v0 = vmul.f32 %v258_v58, %v216_v48  ;;  %v203_v48 = vmul.f32 0.5, %v740_v36  ;;  %v375_v36 = vld [vmem:[%s835_s3 + $0x50] sm:$0xff]  ;;  %v370_v58 = vld [vmem:[%s835_s3 + $0x28] sm:$0xff] }
 0x1cf   :  { %552 = vmatpush3.msra.mxu1 %v375_v36 }
 0x1d0   :  { %596 = vrcp.f32 %v222_v51  ;;  %v266_v7 = vmul.f32 1.442695, %v261_v0  ;;  %553 = vmatprep.subr.mxu1 %v627_v1  ;;  %v366_v0 = vld [vmem:[%s835_s3 + $0x8] sm:$0xff] }
 0x1d1   :  { %598 = vpow2.f32 %v262_v55  ;;  %v374_v55 = vld [vmem:[%s835_s3 + $0x48] sm:$0xff] }
 0x1d2   :  { %600 = vpow2.f32 %v264_v61  ;;  %554 = vmatpush3.msra.mxu1 %v374_v55  ;;  %v368_v61 = vld [vmem:[%s835_s3 + $0x18] sm:$0xff] }
 0x1d3   :  { %602 = vpow2.f32 %v266_v7  ;;  %555 = vmatprep.subr.mxu1 %v627_v1 }
 0x1d4   :  { %556 = vmatpush3.msra.mxu1 %v373_v43 }
 0x1d5   :  { %v593_v54 = vpop.eup %592  ;;  %557 = vmatprep.subr.mxu1 %v627_v1 }
 0x1d6   :  { %v229_v57 = vmul.f32 1.0614054, %v593_v54  ;;  %558 = vmatpush3.msra.mxu1 %v372_v56 }
 0x1d7   :  { %559 = vmatprep.subr.mxu1 %v627_v1 }
 0x1d8   :  { %v232_v59 = vadd.f32 -1.4531521, %v229_v57  ;;  %v371_v57 = vld [vmem:[%s835_s3 + $0x30] sm:$0xff] }
 0x1d9   :  { %v595_v60 = vpop.eup %594  ;;  %560 = vmatpush3.msra.mxu1 %v371_v57 }
 0x1da   :  { %v235_v62 = vmul.f32 %v593_v54, %v232_v59  ;;  %v230_v63 = vmul.f32 1.0614054, %v595_v60  ;;  %561 = vmatprep.subr.mxu1 %v627_v1  ;;  %v369_v59 = vld [vmem:[%s835_s3 + $0x20] sm:$0xff] }
 0x1db   :  { %562 = vmatpush3.msra.mxu1 %v370_v58 }
 0x1dc   :  { %v238_v2 = vadd.f32 1.4214138, %v235_v62  ;;  %v233_v3 = vadd.f32 -1.4531521, %v230_v63  ;;  %563 = vmatprep.subr.mxu1 %v627_v1  ;;  %v367_v62 = vld [vmem:[%s835_s3 + $0x10] sm:$0xff] }
 0x1dd   :  { %v597_v4 = vpop.eup %596  ;;  %564 = vmatpush3.msra.mxu1 %v369_v59 }
 0x1de   :  { %v241_v5 = vmul.f32 %v593_v54, %v238_v2  ;;  %v236_v6 = vmul.f32 %v595_v60, %v233_v3  ;;  %v231_v8 = vmul.f32 1.0614054, %v597_v4  ;;  %v599_v20 = vpop.eup %598  ;;  %565 = vmatprep.subr.mxu1 %v627_v1  ;;  %v365_v2 = vld [vmem:[%s835_s3] sm:$0xff]  ;;  %s633_s3 = smov 64  }
 0x1df   :  { %v601_v27 = vpop.eup %600  ;;  %566 = vmatpush3.msra.mxu1 %v368_v61 }
 0x1e0   :  { %v244_v9 = vadd.f32 -0.28449672, %v241_v5  ;;  %v239_v10 = vadd.f32 1.4214138, %v236_v6  ;;  %v234_v11 = vadd.f32 -1.4531521, %v231_v8  ;;  %v603_v42 = vpop.eup %602  ;;  %567 = vmatprep.subr.mxu1 %v627_v1 }
 0x1e1   :  { %568 = vmatpush3.msra.mxu1 %v367_v62 }
 0x1e2   :  { %v247_v12 = vmul.f32 %v593_v54, %v244_v9  ;;  %v242_v13 = vmul.f32 %v595_v60, %v239_v10  ;;  %v237_v14 = vmul.f32 %v597_v4, %v234_v11  ;;  %569 = vmatprep.subr.mxu1 %v627_v1 }
 0x1e3   :  { %570 = vmatpush3.msra.mxu1 %v366_v0 }
 0x1e4   :  { %v250_v15 = vadd.f32 0.2548296, %v247_v12  ;;  %v245_v16 = vadd.f32 -0.28449672, %v242_v13  ;;  %v240_v17 = vadd.f32 1.4214138, %v237_v14  ;;  %571 = vmatprep.subr.mxu1 %v627_v1 }
 0x1e5   :  { %572 = vmatpush3.msra.mxu1 %v365_v2  ;;  %v343_v12 = vld [vmem:[#allocation4 + $0x12] sm:$0x1] }
 0x1e6   :  { %v253_v18 = vmul.f32 %v593_v54, %v250_v15  ;;  %v248_v19 = vmul.f32 %v595_v60, %v245_v16  ;;  %v243_v21 = vmul.f32 %v597_v4, %v240_v17 }
 0x1e8   :  { %v268_v22 = vmul.f32 %v599_v20, %v253_v18  ;;  %v251_v23 = vadd.f32 0.2548296, %v248_v19  ;;  %v246_v24 = vadd.f32 -0.28449672, %v243_v21 }
 0x1ea   :  { %v271_v25 = vsub.f32 1.0, %v268_v22  ;;  %v254_v26 = vmul.f32 %v595_v60, %v251_v23  ;;  %v249_v30 = vmul.f32 %v597_v4, %v246_v24  ;;  %v500_v22 = vld [vmem:[%s836_s4] ss:$0 sm:$0xff] }
 0x1ec   :  { %v274_v32 = vmul.f32 %v271_v25, %v211_v29  ;;  %v269_v34 = vmul.f32 %v601_v27, %v254_v26  ;;  %v252_v35 = vadd.f32 0.2548296, %v249_v30 }
 0x1ee   :  { %v277_v33 = vadd.f32 1.0, %v274_v32  ;;  %v272_v38 = vsub.f32 1.0, %v269_v34  ;;  %v255_v41 = vmul.f32 %v597_v4, %v252_v35 }
 0x1f0   :  { %v280_v44 = vmul.f32 %v277_v33, %v202_v37  ;;  %v275_v45 = vmul.f32 %v272_v38, %v212_v40  ;;  %v270_v47 = vmul.f32 %v603_v42, %v255_v41 }
 0x1f2   :  { %299 = vrot.lane.b32.xlu0 %v280_v44, %s632_s2  ;;  %v278_v39 = vadd.f32 1.0, %v275_v45  ;;  %v273_v49 = vsub.f32 1.0, %v270_v47 }
 0x1f4   :  { %v281_v51 = vmul.f32 %v278_v39, %v203_v48  ;;  %v276_v31 = vmul.f32 %v273_v49, %v213_v50 }
 0x1f6   :  { %301 = vrot.lane.b32.xlu1 %v281_v51, %s632_s2  ;;  %v279_v53 = vadd.f32 1.0, %v276_v31 }
 0x1f8   :  { %v282_v54 = vmul.f32 %v279_v53, %v204_v52 }
 0x1fa   :  { %303 = vrot.lane.b32.xlu0 %v282_v54, %s632_s2 }
 0x264   :  { %v300_v60 = vpop.permute.xlu0 %299 }
 0x265   :  { %309 = vst.msk [vmem:[#allocation4 + $0x1] sm:$0xff] %vm308_vm5, %v300_v60 }
 0x268   :  { %v302_v63 = vpop.permute.xlu1 %301 }
 0x269   :  { %310 = vst.msk [vmem:[#allocation4 + $0x9] sm:$0xff] %vm308_vm5, %v302_v63 }
 0x26a   :  { %313 = vst.msk [vmem:[#allocation4 + $0x9] sm:$0x1] %vm293_vm15, %v627_v1 }
 0x26c   :  { %v321_v3 = vld [vmem:[#allocation4 + $0x1] sm:$0xff]  ;;  %v304_v5 = vpop.permute.xlu0 %303 }
 0x26d   :  { %v314_v4 = vld [vmem:[#allocation4] sm:$0xff]  ;;  %327 = vrot.lane.b32.xlu1 %v321_v3, %s630_s1  ;;  %312 = vst.msk [vmem:[#allocation4 + $0x11] sm:$0x1] %vm311_vm8, %v304_v5 }
 0x26e   :  { %318 = vst.msk [vmem:[#allocation5] sm:$0xff] %vm317_vm7, %v314_v4 }
 0x270   :  { %v316_v6 = vld [vmem:[#allocation4 + $0x10] sm:$0x1] }
 0x271   :  { %v322_v7 = vld [vmem:[#allocation4 + $0x9] sm:$0xff]  ;;  %320 = vst.msk [vmem:[#allocation5 + $0x10] sm:$0x1] %vm293_vm15, %v316_v6  ;;  %vm475_vm15 = vcmask 64513  }
 0x272   :  { %v341_v8 = vld [vmem:[#allocation4 + $0x2] sm:$0xff]  ;;  %329 = vrot.lane.b32.xlu1 %v322_v7, %s630_s1 }
 0x273   :  { %v315_v9 = vld [vmem:[#allocation4 + $0x8] sm:$0xff]  ;;  %347 = vrot.lane.b32.xlu0 %v341_v8, %s633_s3 }
 0x274   :  { %319 = vst.msk [vmem:[#allocation5 + $0x8] sm:$0xff] %vm317_vm7, %v315_v9  ;;  %v342_v10 = vld [vmem:[#allocation4 + $0xa] sm:$0xff] }
 0x275   :  { %v323_v11 = vld [vmem:[#allocation4 + $0x11] sm:$0x1] }
 0x276   :  { %331 = vrot.lane.b32.xlu1 %v323_v11, %s630_s1 }
 0x277   :  { %349 = vrot.lane.b32.xlu0 %v342_v10, %s633_s3 }
 0x27b   :  { %351 = vrot.lane.b32.xlu0 %v343_v12, %s633_s3 }
 0x2df   :  { %v328_v13 = vpop.permute.xlu1 %327 }
 0x2e0   :  { %337 = vst.msk [vmem:[#allocation5] sm:$0xff] %vm336_vm9, %v328_v13 }
 0x2e4   :  { %v330_v14 = vpop.permute.xlu1 %329 }
 0x2e5   :  { %v348_v15 = vpop.permute.xlu0 %347  ;;  %338 = vst.msk [vmem:[#allocation5 + $0x8] sm:$0xff] %vm336_vm9, %v330_v14 }
 0x2e6   :  { %357 = vst.msk [vmem:[#allocation5] sm:$0xff] %vm356_vm10, %v348_v15 }
 0x2e8   :  { %v332_v16 = vpop.permute.xlu1 %331 }
 0x2e9   :  { %v350_v17 = vpop.permute.xlu0 %349  ;;  %340 = vst.msk [vmem:[#allocation5 + $0x10] sm:$0x1] %vm339_vm11, %v332_v16 }
 0x2ea   :  { %358 = vst.msk [vmem:[#allocation5 + $0x8] sm:$0xff] %vm356_vm10, %v350_v17 }
 0x2ed   :  { %v352_v18 = vpop.permute.xlu0 %351  ;;  %v362_v19 = vld [vmem:[#allocation5] sm:$0xff] }
 0x2ee   :  { %360 = vst.msk [vmem:[#allocation5 + $0x10] sm:$0x1] %vm359_vm12, %v352_v18  ;;  %574 = vmatmul.mubr.msk.f32.vlgmr.msra.gmra.mxu1 %vm383_vm14, %v362_v19 }
 0x2ef   :  { %576 = vmatprep.mubr.msk.f32.mxu1 %vm628_vm6, %v627_v1 }
 0x2f1   :  { %v363_v20 = vld [vmem:[#allocation5 + $0x8] sm:$0xff] }
 0x2f2   :  { %577 = vmatmul.mubr.msk.f32.gmra.mxu1 %vm383_vm14, %v363_v20 }
 0x2f3   :  { %579 = vmatprep.mubr.msk.f32.mxu1 %vm628_vm6, %v627_v1  ;;  %vm477_vm6 = vcmask 57344  }
 0x2f5   :  { %v364_v21 = vld [vmem:[#allocation5 + $0x10] sm:$0x1] }
 0x2f6   :  { %580 = vmatmul.mubr.msk.f32.gmra.mxu1 %vm383_vm14, %v364_v21 }
 0x3ae   :  { %v459_v23 = vpop.f32.mrf.mxu1 }
 0x3af   :  { %v460_v24 = vadd.f32 %v500_v22, %v459_v23 }
 0x3b0   :  { %v575_v25 = vpop.f32.mrf.mxu1 }
 0x3b1   :  { %473 = vst.msk [vmem:[#allocation6] sm:$0xff] %vm283_vm13, %v460_v24 }
 0x3b2   :  { %v464_v26 = vpop.f32.mrf.mxu1 }
 0x3b3   :  { %v465_v27 = vadd.f32 %v500_v22, %v464_v26 }
 0x3b4   :  { %v578_v28 = vpop.f32.mrf.mxu1 }
 0x3b5   :  { %476 = vst.msk [vmem:[#allocation6 + $0x7] sm:$0xfe] %vm475_vm15, %v465_v27 }
 0x3b6   :  { %v469_v29 = vpop.f32.mrf.mxu1 }
 0x3b7   :  { %v470_v1 = vadd.f32 %v500_v22, %v469_v29 }
 0x3b8   :  { %v581_v30 = vpop.f32.mrf.mxu1 }
 0x3b9   :  { %478 = vst.msk [vmem:[#allocation6 + $0xf] sm:$0x1] %vm477_vm6, %v470_v1 }
 0x3ba   :  { %615 = shalt.err (!%p612_p4)
}
 0x3bb   :  { %s635_s4 = smov 128  }
 0x3bc   :  { %490 = dma.vmem_to_hbm [thread:$0]  %s485_s12, 256, %s837_s5, [#allocation7], %s635_s4, %s635_s4, %s632_s2  }
 0x3bd   :  { %624 = dma.done.wait [#allocation7], 256  }
 0x3be   :  { %625 = vsyncadd [#allocation7], 4294967040 }
 0x3bf   :  { %494 = vsyncpa [#allocation7], 1 }

</bundles_post_ra>
